<compile_context>
chip_gen: v7x
topology: tpu7x:2x2x1
jax: 0.10.0
libtpu: 0.0.40
codegen_flags: <defaults>
</compile_context>

<pallas_src>
import numpy as np

import jax
import jax.numpy as jnp
from jax.experimental import pallas as pl
from jax.experimental.pallas import tpu as pltpu


_MAX_TK = 2048   # K tile cap: a single K step covers Cin <= 2048
_MAX_TM = 512    # batch tile cap (weight-stream reuse)
_DEF_TN = 256    # output-channel tile (multiple of 128, v6e MXU friendly)


def _choose_tk(cin, max_tk=_MAX_TK):
    """Pick (tk, k_blocks). Prefer a single K step; else a 128-multiple tile."""
    if cin <= max_tk:
        return cin, 1                       # tk == full dim -> no padding needed
    for cand in range(max_tk, 127, -128):   # try to divide Cin exactly (no pad)
        if cin % cand == 0:
            return cand, cin // cand
    return max_tk, pl.cdiv(cin, max_tk)


def _choose_tm(batch):
    return batch if batch <= _MAX_TM else _MAX_TM


def _choose_tn(cout, m_blocks):
    if cout <= 128:
        return cout
    if cout <= 256:
        # Keep >= 2 parallel N blocks when M provides none (v7x megacore).
        return 128 if m_blocks == 1 else cout
    return _DEF_TN


# ----------------------------- kernel bodies --------------------------------

def _dense_kernel_single_k(x_ref, w_ref, b_ref, o_ref):
    # Single K step: no accumulator, straight epilogue.
    y = jnp.dot(x_ref[...], w_ref[...], preferred_element_type=jnp.float32)
    y = y + b_ref[...]
    o_ref[...] = jnp.maximum(y, 0.2 * y).astype(o_ref.dtype)


def _dense_kernel_multi_k_f32_out(x_ref, w_ref, b_ref, o_ref):
    # f32 output: accumulate directly into the resident output block.
    k = pl.program_id(2)

    @pl.when(k == 0)
    def _():
        o_ref[...] = jnp.zeros_like(o_ref)

    o_ref[...] += jnp.dot(x_ref[...], w_ref[...],
                          preferred_element_type=jnp.float32)

    @pl.when(k == pl.num_programs(2) - 1)
    def _():
        y = o_ref[...] + b_ref[...]
        o_ref[...] = jnp.maximum(y, 0.2 * y)


def _dense_kernel_multi_k(x_ref, w_ref, b_ref, o_ref, acc_ref):
    # Narrow output dtype: accumulate in an f32 VMEM scratch.
    k = pl.program_id(2)

    @pl.when(k == 0)
    def _():
        acc_ref[...] = jnp.zeros_like(acc_ref)

    acc_ref[...] += jnp.dot(x_ref[...], w_ref[...],
                            preferred_element_type=jnp.float32)

    @pl.when(k == pl.num_programs(2) - 1)
    def _():
        y = acc_ref[...] + b_ref[...]
        o_ref[...] = jnp.maximum(y, 0.2 * y).astype(o_ref.dtype)


# ------------------------------- wrappers ------------------------------------

def prepare_dense_block_params(weight, bias, *, compute_dtype=None, max_tk=_MAX_TK):
    """Hoist the weight transpose + K padding out of the per-call path.

    weight: (Cout, Cin) PyTorch nn.Linear layout; bias: (Cout,).
    Returns params = (w_t, b_row, cin, cout, tk, k_blocks); w_t is (Kp, Cout)
    in compute_dtype (contraction on the RHS sublane axis, lane-dense Cout),
    b_row is (1, Cout) float32.
    """
    cout, cin = weight.shape
    if compute_dtype is None:
        compute_dtype = weight.dtype
    tk, k_blocks = _choose_tk(cin, max_tk)
    kp = tk * k_blocks
    w_t = weight.T.astype(compute_dtype)             # (Cin, Cout), done ONCE
    if kp != cin:                                     # K-pad once (zeros are safe)
        w_t = jnp.zeros((kp, cout), compute_dtype).at[:cin, :].set(w_t)
    b_row = bias.reshape(1, cout).astype(jnp.float32)
    return w_t, b_row, cin, cout, tk, k_blocks


def dense_block_apply(x, params, *, out_dtype=None, tm=None, tn=None):
    """y = LeakyReLU_0.2(x @ W^T + b) using pre-prepared params."""
    w_t, b_row, cin, cout, tk, k_blocks = params
    batch = x.shape[0]
    assert x.shape[1] == cin, "x feature dim must match prepared weight"
    compute_dtype = w_t.dtype
    if out_dtype is None:
        out_dtype = x.dtype
    out_dtype = np.dtype(out_dtype)

    kp = tk * k_blocks
    x_c = x.astype(compute_dtype)
    if kp != cin:  # only the K axis ever needs padding (reduction correctness)
        x_c = jnp.zeros((batch, kp), compute_dtype).at[:, :cin].set(x_c)

    tm = _choose_tm(batch) if tm is None else tm
    m_blocks = pl.cdiv(batch, tm)
    tn = _choose_tn(cout, m_blocks) if tn is None else tn
    n_blocks = pl.cdiv(cout, tn)

    itemsize = np.dtype(compute_dtype).itemsize
    cost = pl.CostEstimate(
        flops=2 * batch * cin * cout,
        transcendentals=0,
        bytes_accessed=(batch * kp + kp * cout) * itemsize
        + cout * 4 + batch * cout * out_dtype.itemsize,
    )

    use_scratch = False
    if k_blocks == 1:
        grid = (m_blocks, n_blocks)
        kernel = _dense_kernel_single_k
        in_specs = [
            pl.BlockSpec((tm, tk), lambda i, j: (i, 0)),   # x tile
            pl.BlockSpec((tk, tn), lambda i, j: (0, j)),   # W^T tile
            pl.BlockSpec((1, tn), lambda i, j: (0, j)),    # bias tile
        ]
        out_specs = pl.BlockSpec((tm, tn), lambda i, j: (i, j))
        semantics = ("parallel", "parallel")
    else:
        grid = (m_blocks, n_blocks, k_blocks)
        in_specs = [
            pl.BlockSpec((tm, tk), lambda i, j, k: (i, k)),
            pl.BlockSpec((tk, tn), lambda i, j, k: (k, j)),
            pl.BlockSpec((1, tn), lambda i, j, k: (0, j)),
        ]
        out_specs = pl.BlockSpec((tm, tn), lambda i, j, k: (i, j))
        semantics = ("parallel", "parallel", "arbitrary")
        if out_dtype == np.dtype(np.float32):
            kernel = _dense_kernel_multi_k_f32_out   # accumulate in o_ref
        else:
            kernel = _dense_kernel_multi_k           # f32 VMEM scratch
            use_scratch = True

    scratch_shapes = [pltpu.VMEM((tm, tn), jnp.float32)] if use_scratch else []

    # Double-buffered working-set estimate; raise scoped-VMEM limit only if
    # needed and keep it <= 48 MiB (safe on v7x's 64 MiB per-TC VMEM).
    ws = 2 * (tm * tk + tk * tn) * itemsize
    ws += 2 * tm * tn * out_dtype.itemsize + 2 * tn * 4
    if use_scratch:
        ws += tm * tn * 4
    cparams = {"dimension_semantics": semantics}
    if ws > 24 * 2**20:
        cparams["vmem_limit_bytes"] = int(min(48 * 2**20, ws + 8 * 2**20))

    return pl.pallas_call(
        kernel,
        out_shape=jax.ShapeDtypeStruct((batch, cout), out_dtype),
        grid_spec=pltpu.PrefetchScalarGridSpec(
            num_scalar_prefetch=0,
            grid=grid,
            in_specs=in_specs,
            out_specs=out_specs,
            scratch_shapes=scratch_shapes,
        ),
        compiler_params=pltpu.CompilerParams(**cparams),
        cost_estimate=cost,
    )(x_c, w_t, b_row)


def dense_block(x, weight, bias, *, compute_dtype=None, out_dtype=None,
                max_tk=_MAX_TK):
    """One-off convenience wrapper (prep + apply). For repeated calls, call
    prepare_dense_block_params() once and reuse the result."""
    params = prepare_dense_block_params(weight, bias,
                                        compute_dtype=compute_dtype,
                                        max_tk=max_tk)
    return dense_block_apply(x, params, out_dtype=out_dtype)


def xavier_uniform(key, out_features, in_features, gain=1.0, dtype=jnp.float32):
    # Matches torch.nn.init.xavier_uniform_ for a (out, in) Linear weight.
    limit = gain * float(np.sqrt(6.0 / (in_features + out_features)))
    return jax.random.uniform(key, (out_features, in_features), dtype=dtype,
                              minval=-limit, maxval=limit)


def _leaky_ref(x, weight, bias):
    y = x @ weight.T + bias
    return jnp.where(y >= 0, y, 0.2 * y)


if __name__ == "__main__":
    key = jax.random.PRNGKey(0)
    k_x, k_w, k_b, k_x2, k_w2, k_b2 = jax.random.split(key, 6)

    # --- Dense_block at small shapes: batch=8, in=32, out=64 -----------------
    batch, in_channels, out_channels = 8, 32, 64
    x = jax.random.normal(k_x, (batch, in_channels), dtype=jnp.float32)
    weight = xavier_uniform(k_w, out_channels, in_channels, gain=1.0)
    b_bound = 1.0 / float(np.sqrt(in_channels))
    bias = jax.random.uniform(k_b, (out_channels,), dtype=jnp.float32,
                              minval=-b_bound, maxval=b_bound)
    ref = _leaky_ref(x, weight, bias)

    # f32 path, single-K kernel, params prepared once (hoisted transpose).
    params_f32 = prepare_dense_block_params(weight, bias)
    out_f32 = dense_block_apply(x, params_f32)
    jax.block_until_ready(out_f32)
    assert out_f32.shape == (batch, out_channels)
    assert jnp.allclose(out_f32, ref, atol=1e-5, rtol=1e-5), "f32 mismatch"

    # bf16-operand path (fast MXU on v6e/v7x), f32 accumulation.
    params_bf16 = prepare_dense_block_params(weight, bias,
                                             compute_dtype=jnp.bfloat16)
    out_bf16 = dense_block_apply(x, params_bf16)
    jax.block_until_ready(out_bf16)
    assert jnp.allclose(out_bf16, ref, atol=5e-2, rtol=5e-2), "bf16 mismatch"

    # --- Multi-K reduction paths (forced with a small max_tk) ----------------
    in2, out2 = 256, 64
    x2 = jax.random.normal(k_x2, (batch, in2), dtype=jnp.float32)
    w2 = xavier_uniform(k_w2, out2, in2, gain=1.0)
    b2 = jax.random.uniform(k_b2, (out2,), dtype=jnp.float32,
                            minval=-1.0 / 16.0, maxval=1.0 / 16.0)
    ref2 = _leaky_ref(x2, w2, b2)

    params2 = prepare_dense_block_params(w2, b2, max_tk=128)  # -> 2 K blocks
    out2_f32 = dense_block_apply(x2, params2)                 # accum in o_ref
    jax.block_until_ready(out2_f32)
    assert jnp.allclose(out2_f32, ref2, atol=1e-4, rtol=1e-4), "multi-K f32 mismatch"

    out2_bf16 = dense_block_apply(x2, params2, out_dtype=jnp.bfloat16)  # scratch path
    jax.block_until_ready(out2_bf16)
    assert jnp.allclose(out2_bf16.astype(jnp.float32), ref2,
                        atol=5e-2, rtol=2e-2), "multi-K bf16-out mismatch"

    print("KERNEL_OK")
</pallas_src>

<mosaic_0001>
module attributes {stable_mosaic.version = 11 : i64} {
  func.func @_dense_kernel_single_k(%arg0: i32, %arg1: i32, %arg2: memref<8x32xf32, #tpu.memory_space<vmem>>, %arg3: memref<32x64xf32, #tpu.memory_space<vmem>>, %arg4: memref<1x64xf32, #tpu.memory_space<vmem>>, %arg5: memref<8x64xf32, #tpu.memory_space<vmem>>) attributes {dimension_semantics = [#tpu.dimension_semantics<parallel>, #tpu.dimension_semantics<parallel>], iteration_bounds = array<i64: 1, 1>, scalar_prefetch = 0 : i64, scratch_operands = 0 : i64, tpu.core_type = #tpu.core_type<tc>, window_params = [{transform_indices = @transform_0, window_bounds = array<i64: 8, 32>}, {transform_indices = @transform_1, window_bounds = array<i64: 32, 64>}, {transform_indices = @transform_2, window_bounds = array<i64: 1, 64>}, {transform_indices = @transform_3, window_bounds = array<i64: 8, 64>}]} {
    %c0 = arith.constant 0 : index
    %c0_0 = arith.constant 0 : index
    %0 = vector.load %arg2[%c0, %c0_0] : memref<8x32xf32, #tpu.memory_space<vmem>>, vector<8x32xf32>
    %c0_1 = arith.constant 0 : index
    %c0_2 = arith.constant 0 : index
    %1 = vector.load %arg3[%c0_1, %c0_2] : memref<32x64xf32, #tpu.memory_space<vmem>>, vector<32x64xf32>
    %cst = arith.constant dense<0.000000e+00> : vector<8x64xf32>
    %2 = tpu.matmul %0, %1, %cst {dimension_numbers = #tpu.dot_dimension_numbers<[1], [0], [0], [1], [0, 0, 1, 1], [], []>} : vector<8x32xf32>, vector<32x64xf32>, vector<8x64xf32> -> vector<8x64xf32>
    %c0_3 = arith.constant 0 : index
    %c0_4 = arith.constant 0 : index
    %3 = vector.load %arg4[%c0_3, %c0_4] : memref<1x64xf32, #tpu.memory_space<vmem>>, vector<1x64xf32>
    %4 = vector.broadcast %3 : vector<1x64xf32> to vector<8x64xf32>
    %5 = arith.addf %2, %4 : vector<8x64xf32>
    %cst_5 = arith.constant 2.000000e-01 : f32
    %6 = vector.broadcast %cst_5 : f32 to vector<8x64xf32>
    %7 = arith.mulf %6, %5 : vector<8x64xf32>
    %8 = arith.maximumf %5, %7 : vector<8x64xf32>
    %c0_6 = arith.constant 0 : index
    %c0_7 = arith.constant 0 : index
    %9 = vector.load %arg5[%c0_6, %c0_7] : memref<8x64xf32, #tpu.memory_space<vmem>>, vector<8x64xf32>
    tpu.vector_store %arg5[%c0_6, %c0_7], %8 {strides = array<i32>} : memref<8x64xf32, #tpu.memory_space<vmem>>, vector<8x64xf32>,
    return
  }
  func.func @transform_0(%arg0: i32, %arg1: i32) -> (i32, i32) {
    %c0_i32 = arith.constant 0 : i32
    %c0_i32_0 = arith.constant 0 : i32
    return %arg0, %c0_i32 : i32, i32
  }
  func.func @transform_1(%arg0: i32, %arg1: i32) -> (i32, i32) {
    %c0_i32 = arith.constant 0 : i32
    %c0_i32_0 = arith.constant 0 : i32
    return %c0_i32, %arg1 : i32, i32
  }
  func.func @transform_2(%arg0: i32, %arg1: i32) -> (i32, i32) {
    %c0_i32 = arith.constant 0 : i32
    %c0_i32_0 = arith.constant 0 : i32
    return %c0_i32, %arg1 : i32, i32
  }
  func.func @transform_3(%arg0: i32, %arg1: i32) -> (i32, i32) {
    %c0_i32 = arith.constant 0 : i32
    return %arg0, %arg1 : i32, i32
  }
}

</mosaic_0001>

<bundles_post_ra>
// kernel: tpu_custom_call.1
= control target key start
LH: loop header
LB: loop body
LE: loop exit
PB: predicated region body
PF: predicated region fallthrough
CT: control target
= control target key end

     0   :  { %8 = vsyncpa [#allocation3], 0  ;;  %s325_s0 = inlined_call_operand.hbm [shape: f32[8,32], index: 0, kind: input, shape index: {}]   ;;  %s326_s1 = inlined_call_operand.hbm [shape: f32[32,64], index: 1, kind: input, shape index: {}]   ;;  %s327_s2 = inlined_call_operand.vmem [shape: f32[1,64], index: 2, kind: input, shape index: {}]   ;;  %s328_s3 = inlined_call_operand.hbm [shape: f32[8,64], index: 3, kind: output, shape index: {}]  }
   0x1   :  { %9 = vsyncpa [#allocation6], 0 }
   0x2   :  { %10 = vsyncpa [#allocation4], 0  ;;  %s251_s12 = smov [#allocation2]   ;;  %s252_s14 = smov [#allocation5]  }
   0x3   :  { %s17_s13 = sshll.u32 %s251_s12, 4  ;;  %s26_s15 = sshll.u32 %s252_s14, 4  ;;  %s18_s13 = int_to_ptr.vmem [resolvable:$true] %s17_s13  ;;  %s279_s15 = int_to_ptr.vmem [resolvable:$true] %s26_s15 }
   0x4   :  { %s179_s18 = scalar_lea.hbm %s325_s0, 128 }
   0x5   :  { %p180_p0 = scmp.ne.s32.totalorder %s325_s0, %s179_s18  ;;  %p183_p1 = scmp.lt.u32.totalorder %s179_s18, %s325_s0 }
   0x7   :  { %p185_p2 = pnand %p183_p1, %p180_p0 }
   0x9   :  { %188 = shalt.err (!%p185_p2)
}
   0xa   :  { %s189_s23 = scalar_lea.vmem %s18_s13, 128  ;;  %p194_p4 = scmp.lt.s32.totalorder %s18_s13, %s18_s13 }
   0xb   :  { %p190_p3 = scmp.ne.s32.totalorder %s18_s13, %s189_s23  ;;  %p195_p5 = scmp.lt.s32.totalorder %s189_s23, %s189_s23 }
   0xd   :  { %p196_p6 = por %p195_p5, %p194_p4 }
   0xf   :  { %p197_p7 = pnand %p196_p6, %p190_p3 }
  0x11   :  { %200 = shalt.err (!%p197_p7)
}
  0x12   :  { %20 = dma.hbm_to_vmem [thread:$0]  %s325_s0, 128, %s18_s13, [#allocation3]  }
  0x13   :  { %s201_s28 = scalar_lea.hbm %s326_s1, 512 }
  0x14   :  { %p202_p8 = scmp.ne.s32.totalorder %s326_s1, %s201_s28  ;;  %p205_p9 = scmp.lt.u32.totalorder %s201_s28, %s326_s1 }
  0x16   :  { %p207_p10 = pnand %p205_p9, %p202_p8 }
  0x18   :  { %210 = shalt.err (!%p207_p10)
}
  0x19   :  { %s211_s6 = scalar_lea.vmem %s279_s15, 512  ;;  %p216_p12 = scmp.lt.s32.totalorder %s279_s15, %s279_s15 }
  0x1a   :  { %p212_p11 = scmp.ne.s32.totalorder %s279_s15, %s211_s6  ;;  %p217_p13 = scmp.lt.s32.totalorder %s211_s6, %s211_s6 }
  0x1c   :  { %p218_p0 = por %p217_p13, %p216_p12 }
  0x1e   :  { %p219_p1 = pnand %p218_p0, %p212_p11 }
  0x20   :  { %222 = shalt.err (!%p219_p1)
}
  0x21   :  { %s253_s0 = smov 128   ;;  %s254_s7 = smov 8  }
  0x22   :  { %32 = dma.hbm_to_vmem [thread:$0]  %s326_s1, 512, %s279_s15, [#allocation6], %s253_s0, %s253_s0, %s254_s7  }
  0x23   :  { %245 = dma.done.wait [#allocation3], 128  }
  0x24   :  { %246 = vsyncadd [#allocation3], 4294967168 }
  0x25   :  { %247 = dma.done.wait [#allocation6], 512  }
  0x26   :  { %248 = vsyncadd [#allocation6], 4294966784  ;;  %v255_v0 = vmov 0.0|0.0   ;;  %vm256_vm0 = vmmov 0   ;;  %v257_v1 = vmov 0.0   ;;  %v42_v2 = vld [vmem:[#allocation5] sm:$0xff] }
  0x27   :  { %165 = vmatprep.subr.bf16.mxu0 %v255_v0  ;;  %162 = vmatprep.mubr.msk.f32.mxu0 %vm256_vm0, %v257_v1  ;;  %v43_v3 = vld [vmem:[#allocation5 + $0x8] sm:$0xff]  ;;  %v44_v4 = vld [vmem:[#allocation5 + $0x10] sm:$0xff]  ;;  %v45_v6 = vld [vmem:[#allocation5 + $0x18] sm:$0xff]  ;;  %vm53_vm1 = vcmask 261120   ;;  %s258_s11 = smov [#allocation7]   ;;  %vm129_vm2 = vcmask 523264  }
  0x28   :  { %v166_v5 = vpack.c.bf16 %v43_v3, %v42_v2  ;;  %v169_v7 = vpack.c.bf16 %v45_v6, %v44_v4  ;;  %v41_v8 = vld [vmem:[#allocation2] sm:$0xff]  ;;  %s137_s12 = sshll.u32 %s258_s11, 4  ;;  %s138_s12 = int_to_ptr.vmem [resolvable:$true] %s137_s12 }
  0x29   :  { %v147_v9 = vld [vmem:[%s327_s2] ss:$0 sm:$0xff]  ;;  %s223_s13 = scalar_lea.vmem %s138_s12, 128  ;;  %p228_p3 = scmp.lt.s32.totalorder %s138_s12, %s138_s12 }
  0x2a   :  { %167 = vmatpush3.bf16.msra.mxu0 %v166_v5  ;;  %p224_p2 = scmp.ne.s32.totalorder %s138_s12, %s223_s13  ;;  %p229_p4 = scmp.lt.s32.totalorder %s223_s13, %s223_s13 }
  0x2b   :  { %168 = vmatprep.subr.bf16.mxu0 %v255_v0 }
  0x2c   :  { %p230_p5 = por %p229_p4, %p228_p3 }
  0x2e   :  { %170 = vmatpush3.bf16.msra.mxu0 %v169_v7  ;;  %p231_p6 = pnand %p230_p5, %p224_p2 }
  0x31   :  { %163 = vmatmul.mubr.msk.f32.vlgmr.msra.gmra.mrb[0].mxu0 %vm53_vm1, %v41_v8 }
 0x104   :  { %v123_v10 = vpop.f32.mrb[0].mxu0 }
 0x105   :  { %v124_v11 = vadd.f32 %v147_v9, %v123_v10  ;;  %v164_v12 = vpop.f32.mrb[1].mxu0 }
 0x107   :  { %v127_v13 = vmul.f32 0.2, %v124_v11 }
 0x109   :  { %v128_v14 = vmax.f32 %v124_v11, %v127_v13 }
 0x10b   :  { %130 = vst.msk [vmem:[#allocation7] sm:$0xff] %vm129_vm2, %v128_v14 }
 0x10c   :  { %234 = shalt.err (!%p231_p6)
}
 0x10d   :  { %s235_s2 = scalar_lea.hbm %s328_s3, 128 }
 0x10e   :  { %p236_p7 = scmp.ne.s32.totalorder %s328_s3, %s235_s2  ;;  %p239_p8 = scmp.lt.u32.totalorder %s235_s2, %s328_s3 }
 0x110   :  { %p241_p9 = pnand %p239_p8, %p236_p7 }
 0x112   :  { %244 = shalt.err (!%p241_p9)
}
 0x113   :  { %140 = dma.vmem_to_hbm [thread:$0]  %s138_s12, 128, %s328_s3, [#allocation4]  }
 0x114   :  { %249 = dma.done.wait [#allocation4], 128  }
 0x115   :  { %250 = vsyncadd [#allocation4], 4294967168 }
 0x116   :  { %144 = vsyncpa [#allocation3], 1 }
 0x117   :  { %145 = vsyncpa [#allocation6], 1 }
 0x118   :  { %146 = vsyncpa [#allocation4], 1 }

</bundles_post_ra>
